<compile_context>
chip_gen: v5e
topology: v5e:2x2
jax: 0.10.0
libtpu: 0.0.40
codegen_flags: <defaults>
</compile_context>

<pallas_src>
import functools

import jax
import jax.numpy as jnp
from jax import lax
from jax.experimental import pallas as pl
from jax.experimental.pallas import tpu as pltpu

_VMEM_LIMIT = 48 * 1024 * 1024


# ----------------------------------------------------------------------------
# Bilinear x2 upsample (align_corners=True), separable: two matmul kernels.
# ----------------------------------------------------------------------------
def _interp_matrix(in_size, out_size):
    """PyTorch UpsamplingBilinear2d (align_corners=True) interpolation matrix."""
    if out_size == 1:
        src = jnp.zeros((1,), jnp.float32)
    else:
        src = jnp.arange(out_size, dtype=jnp.float32) * (in_size - 1) / (out_size - 1)
    i0 = jnp.clip(jnp.floor(src).astype(jnp.int32), 0, in_size - 1)
    i1 = jnp.clip(i0 + 1, 0, in_size - 1)
    frac = src - i0.astype(jnp.float32)
    return (jax.nn.one_hot(i0, in_size, dtype=jnp.float32) * (1.0 - frac)[:, None]
            + jax.nn.one_hot(i1, in_size, dtype=jnp.float32) * frac[:, None])


def _interp_kernel(x_ref, m_ref, o_ref):
    # x: (1, S, F), m: (So, S) -> o: (1, So, F).  f32 compute, bf16 store.
    x = x_ref[0].astype(jnp.float32)
    y = jnp.dot(m_ref[...], x, preferred_element_type=jnp.float32)
    o_ref[0] = y.astype(o_ref.dtype)


def _apply_interp(x, m, out_dtype):
    """Per-batch matmul along the leading spatial axis: (N,S,F) -> (N,So,F)."""
    N, S, F = x.shape
    So = m.shape[0]
    return pl.pallas_call(
        _interp_kernel,
        out_shape=jax.ShapeDtypeStruct((N, So, F), out_dtype),
        grid_spec=pltpu.PrefetchScalarGridSpec(
            num_scalar_prefetch=0,
            grid=(N,),
            in_specs=[pl.BlockSpec((1, S, F), lambda b: (b, 0, 0)),
                      pl.BlockSpec((So, S), lambda b: (0, 0))],
            out_specs=pl.BlockSpec((1, So, F), lambda b: (b, 0, 0)),
        ),
        compiler_params=pltpu.CompilerParams(
            dimension_semantics=("parallel",),
            vmem_limit_bytes=_VMEM_LIMIT),
    )(x, m)


def upsample_bilinear_x2(x_nhwc, out_dtype=jnp.bfloat16):
    """(N, H, W, C) -> (N, 2H, 2W, C), align_corners=True, separable passes."""
    N, H, W, C = x_nhwc.shape
    Ho, Wo = 2 * H, 2 * W
    A = _interp_matrix(H, Ho)          # (Ho, H) f32
    B = _interp_matrix(W, Wo)          # (Wo, W) f32
    y = _apply_interp(x_nhwc.reshape(N, H, W * C), A, jnp.bfloat16)   # (N, Ho, W*C)
    y = y.reshape(N, Ho, W, C).transpose(0, 2, 1, 3).reshape(N, W, Ho * C)
    y = _apply_interp(y, B, out_dtype)                                # (N, Wo, Ho*C)
    return y.reshape(N, Wo, Ho, C).transpose(0, 2, 1, 3)              # (N, Ho, Wo, C)


# ----------------------------------------------------------------------------
# CoreCNNBlock, pass A: conv1 -> dwconv3x3 -> conv3, plus SE pooled-sum.
# Input lives in a Th-row-padded HBM buffer (rows [Th, Th+H) hold the image).
# ----------------------------------------------------------------------------
def _core_convs_kernel(x_hbm, w1_ref, b1_ref, w2_ref, b2_ref, w3_ref, b3_ref,
                       y3_ref, pooled_ref, xh_ref, dma_sem, *, H, W, Th, Cin, C):
    b = pl.program_id(0)
    i = pl.program_id(1)
    r0 = i * Th                                       # first output row (image coords)

    # Manual DMA: row tile + 2-row halo from the Th-padded input.
    cp = pltpu.make_async_copy(
        x_hbm.at[b, pl.ds(Th + r0 - 2, Th + 4)], xh_ref, dma_sem)
    cp.start()
    cp.wait()

    # conv1 (1x1, bias+BN folded) + ReLU  (bf16 MXU, f32 accumulate).
    xv = xh_ref[...].reshape((Th + 4) * W, Cin)
    y1 = jnp.dot(xv, w1_ref[...], preferred_element_type=jnp.float32) + b1_ref[...]
    y1 = jnp.maximum(y1, 0.0).astype(jnp.bfloat16).reshape(Th + 4, W, C)
    # Zero the rows that fall outside the image, so the 'same' zero padding of
    # conv2/conv3 is exact (this also neutralizes uninitialized halo rows).
    rows1 = lax.broadcasted_iota(jnp.int32, (Th + 4, 1, 1), 0) + (r0 - 2)
    y1 = jnp.where((rows1 >= 0) & (rows1 < H), y1, jnp.zeros_like(y1))

    def shift_w(a, dx):
        # out[:, w, :] = a[:, w + dx, :], zero outside [0, W): XLU roll + mask.
        if dx == 0:
            return a
        rolled = pltpu.roll(a, shift=(-dx) % W, axis=1)
        col = lax.broadcasted_iota(jnp.int32, (1, W, 1), 1)
        valid = (col < W - dx) if dx > 0 else (col >= -dx)
        return jnp.where(valid, rolled, jnp.zeros_like(rolled))

    # conv2: depthwise 3x3 (bias+BN folded) + ReLU on rows [r0-1, r0+Th+1).
    # Taps multiply in bf16 (VPU), accumulate in f32.
    w2 = w2_ref[...]                                   # (9, C) bf16
    y1s = [shift_w(y1, dx) for dx in (-1, 0, 1)]
    acc2 = jnp.zeros((Th + 2, W, C), jnp.float32)
    for dy in range(3):
        for dxi in range(3):
            acc2 = acc2 + y1s[dxi][dy:dy + Th + 2] * w2[dy * 3 + dxi].reshape(1, 1, C)
    y2 = jnp.maximum(acc2 + b2_ref[...].reshape(1, 1, C), 0.0)
    rows2 = lax.broadcasted_iota(jnp.int32, (Th + 2, 1, 1), 0) + (r0 - 1)
    y2 = jnp.where((rows2 >= 0) & (rows2 < H), y2, jnp.zeros_like(y2))
    y2 = y2.astype(jnp.bfloat16)

    # conv3: dense 3x3 (bias+BN folded) as 9 accumulating (Th*W,C)x(C,C) matmuls.
    y2s = [shift_w(y2, dx) for dx in (-1, 0, 1)]
    acc3 = jnp.zeros((Th * W, C), jnp.float32)
    for dy in range(3):
        for dxi in range(3):
            tap = y2s[dxi][dy:dy + Th].reshape(Th * W, C)
            acc3 = acc3 + jnp.dot(tap, w3_ref[dy * 3 + dxi],
                                  preferred_element_type=jnp.float32)
    y3 = acc3 + b3_ref[...]                            # (Th*W, C) f32

    # SE global-average-pool: partial sum accumulated across the row-tile axis.
    @pl.when(i == 0)
    def _():
        pooled_ref[...] = jnp.zeros_like(pooled_ref)
    pooled_ref[...] += jnp.sum(y3, axis=0, keepdims=True).reshape(1, 1, C)

    y3_ref[0] = y3.reshape(Th, W, C).astype(y3_ref.dtype)


# ----------------------------------------------------------------------------
# CoreCNNBlock, pass B: SE gate * y3 + residual -> ReLU.
# ----------------------------------------------------------------------------
def _core_apply_kernel_identity(y3_ref, gate_ref, x_ref, o_ref):
    y3 = y3_ref[0].astype(jnp.float32)                 # (Th, W, C)
    res = x_ref[0].astype(jnp.float32)                 # (Th, W, C)
    out = jnp.maximum(y3 * gate_ref[...] + res, 0.0)
    o_ref[0] = out.astype(o_ref.dtype)


def _core_apply_kernel_project(y3_ref, gate_ref, x_ref, wm_ref, bm_ref, o_ref,
                               *, Th, W):
    Cin, C = wm_ref.shape
    y3 = y3_ref[0].astype(jnp.float32)                 # (Th, W, C)
    xm = x_ref[0].reshape(Th * W, Cin)                 # bf16
    res = (jnp.dot(xm, wm_ref[...], preferred_element_type=jnp.float32)
           + bm_ref[...]).reshape(Th, W, C)
    out = jnp.maximum(y3 * gate_ref[...] + res, 0.0)
    o_ref[0] = out.astype(o_ref.dtype)


def core_cnn_block(x_padded, H, W, Th, p, *, padded_out=True, out_dtype=jnp.bfloat16):
    """CoreCNNBlock.  x_padded: (N, H + 2*Th, W, Cin) bf16, image in rows [Th, Th+H).
    Returns (N, H + 2*Th, W, C) if padded_out (chains into the next block),
    else (N, H, W, C)."""
    N = x_padded.shape[0]
    Cin = x_padded.shape[-1]
    C = p['b1f'].shape[-1]
    nT = H // Th

    # ---- pass A: convolutions + SE pooled sum -------------------------------
    kernel_a = functools.partial(_core_convs_kernel, H=H, W=W, Th=Th, Cin=Cin, C=C)
    y3, pooled = pl.pallas_call(
        kernel_a,
        out_shape=(jax.ShapeDtypeStruct((N, H, W, C), jnp.bfloat16),
                   jax.ShapeDtypeStruct((N, 1, C), jnp.float32)),
        grid_spec=pltpu.PrefetchScalarGridSpec(
            num_scalar_prefetch=0,
            grid=(N, nT),
            in_specs=[
                pl.BlockSpec(memory_space=pl.ANY),                    # x (manual DMA)
                pl.BlockSpec((Cin, C), lambda b, i: (0, 0)),          # conv1 w
                pl.BlockSpec((1, C), lambda b, i: (0, 0)),            # conv1 b
                pl.BlockSpec((9, C), lambda b, i: (0, 0)),            # dwconv w
                pl.BlockSpec((1, C), lambda b, i: (0, 0)),            # dwconv b
                pl.BlockSpec((9, C, C), lambda b, i: (0, 0, 0)),      # conv3 w
                pl.BlockSpec((1, C), lambda b, i: (0, 0)),            # conv3 b
            ],
            out_specs=(pl.BlockSpec((1, Th, W, C), lambda b, i: (b, i, 0, 0)),
                       pl.BlockSpec((1, 1, C), lambda b, i: (b, 0, 0))),
            scratch_shapes=[pltpu.VMEM((Th + 4, W, Cin), jnp.bfloat16),
                            pltpu.SemaphoreType.DMA],
        ),
        compiler_params=pltpu.CompilerParams(
            dimension_semantics=("parallel", "arbitrary"),
            vmem_limit_bytes=_VMEM_LIMIT),
    )(x_padded, p['w1f'], p['b1f'], p['w2f'], p['b2f'], p['w3f'], p['b3f'])

    # ---- SE excitation MLP (tiny, exact-erf GELU) in plain JAX --------------
    pooled_mean = pooled[:, 0, :] / float(H * W)                      # (N, C) f32
    h = jax.nn.gelu(pooled_mean @ p['wse1'], approximate=False)
    gate = jax.nn.sigmoid(h @ p['wse2']).reshape(N, 1, C)             # (N, 1, C) f32

    # ---- pass B: gate * y3 + residual -> ReLU --------------------------------
    Hout = H + 2 * Th if padded_out else H
    row_off = 1 if padded_out else 0
    if p['identity']:
        kernel_b = _core_apply_kernel_identity
        extra_specs, extra_args = [], []
    else:
        kernel_b = functools.partial(_core_apply_kernel_project, Th=Th, W=W)
        extra_specs = [pl.BlockSpec((Cin, C), lambda b, i: (0, 0)),
                       pl.BlockSpec((1, C), lambda b, i: (0, 0))]
        extra_args = [p['wmf'], p['bmf']]

    out = pl.pallas_call(
        kernel_b,
        out_shape=jax.ShapeDtypeStruct((N, Hout, W, C), out_dtype),
        grid_spec=pltpu.PrefetchScalarGridSpec(
            num_scalar_prefetch=0,
            grid=(N, nT),
            in_specs=[pl.BlockSpec((1, Th, W, C), lambda b, i: (b, i, 0, 0)),
                      pl.BlockSpec((1, 1, C), lambda b, i: (b, 0, 0)),
                      pl.BlockSpec((1, Th, W, Cin), lambda b, i: (b, i + 1, 0, 0)),
                      *extra_specs],
            out_specs=pl.BlockSpec((1, Th, W, C),
                                   lambda b, i: (b, i + row_off, 0, 0)),
        ),
        compiler_params=pltpu.CompilerParams(
            dimension_semantics=("parallel", "parallel"),
            vmem_limit_bytes=_VMEM_LIMIT),
    )(y3, gate, x_padded, *extra_args)
    return out


# ----------------------------------------------------------------------------
# Deterministic parameter initialization with bias + BatchNorm folding.
# ----------------------------------------------------------------------------
def _bn_affine(key, C, eps=1e-5):
    k1, k2, k3, k4 = jax.random.split(key, 4)
    gamma = 1.0 + 0.1 * jax.random.normal(k1, (C,), jnp.float32)
    beta = 0.1 * jax.random.normal(k2, (C,), jnp.float32)
    mean = 0.1 * jax.random.normal(k3, (C,), jnp.float32)
    var = 1.0 + 0.1 * jax.random.uniform(k4, (C,), jnp.float32)
    scale = gamma / jnp.sqrt(var + eps)
    shift = beta - mean * scale
    return scale.reshape(1, C), shift.reshape(1, C)


def init_core_block_params(key, Cin, C, reduction=16):
    Cr = max(1, C // reduction)
    ks = jax.random.split(key, 12)
    std = 0.2
    w1 = std * jax.random.normal(ks[0], (Cin, C), jnp.float32)
    b1 = std * jax.random.normal(ks[1], (1, C), jnp.float32)
    s1, t1 = _bn_affine(ks[2], C)
    w2 = std * jax.random.normal(ks[3], (3, 3, C), jnp.float32)
    b2 = std * jax.random.normal(ks[4], (1, C), jnp.float32)
    s2, t2 = _bn_affine(ks[5], C)
    w3 = std * jax.random.normal(ks[6], (3, 3, C, C), jnp.float32)   # (dy, dx, cin, cout)
    b3 = std * jax.random.normal(ks[7], (1, C), jnp.float32)
    s3, t3 = _bn_affine(ks[8], C)

    p = {
        # y = s*(x@w + b) + t  ==  x@(w*s) + (s*b + t)
        'w1f': (w1 * s1).astype(jnp.bfloat16),
        'b1f': s1 * b1 + t1,
        'w2f': (w2 * s2.reshape(1, 1, C)).reshape(9, C).astype(jnp.bfloat16),
        'b2f': s2 * b2 + t2,
        'w3f': (w3 * s3.reshape(1, 1, 1, C)).reshape(9, C, C).astype(jnp.bfloat16),
        'b3f': s3 * b3 + t3,
        'wse1': std * jax.random.normal(ks[9], (C, Cr), jnp.float32),
        'wse2': std * jax.random.normal(ks[10], (Cr, C), jnp.float32),
        'identity': Cin == C,
    }
    if Cin != C:
        km1, km2 = jax.random.split(ks[11])
        wm = std * jax.random.normal(km1, (Cin, C), jnp.float32)
        sm, tm = _bn_affine(km2, C)
        p['wmf'] = (wm * sm).astype(jnp.bfloat16)       # match conv has bias=False
        p['bmf'] = tm
    return p


def init_decoder_block_params(key, depth, Cin, Cout):
    keys = jax.random.split(key, depth + 1)
    return {
        'match': init_core_block_params(keys[0], Cin, Cout),
        'blocks': [init_core_block_params(keys[i + 1], Cout, Cout) for i in range(depth)],
    }


def _pick_row_tile(H, target=8):
    best = 1
    for t in range(2, min(H, target) + 1):
        if H % t == 0:
            best = t
    return best if best >= 2 else H


# ----------------------------------------------------------------------------
# DecoderBlock forward.
# ----------------------------------------------------------------------------
def decoder_block_forward(x_nchw, params, depth):
    x = jnp.transpose(x_nchw, (0, 2, 3, 1))             # NCHW -> NHWC
    x = upsample_bilinear_x2(x)                         # (N, 2H, 2W, Cin) bf16
    N, Ho, Wo, _ = x.shape
    Th = _pick_row_tile(Ho)
    # One-time Th-row zero pad; subsequent blocks chain via padded outputs.
    x = jnp.pad(x, ((0, 0), (Th, Th), (0, 0), (0, 0)))
    blocks = [params['match']] + params['blocks']
    n_blocks = len(blocks)
    for bi, bp in enumerate(blocks):
        last = bi == n_blocks - 1
        x = core_cnn_block(x, Ho, Wo, Th, bp,
                           padded_out=not last,
                           out_dtype=jnp.float32 if last else jnp.bfloat16)
    return jnp.transpose(x, (0, 3, 1, 2))               # NHWC -> NCHW, f32


if __name__ == "__main__":
    key = jax.random.PRNGKey(0)
    kx, kp = jax.random.split(key)

    N, Cin, Cout, H, W, depth = 2, 8, 16, 16, 16, 2
    x = jax.random.normal(kx, (N, Cin, H, W), jnp.float32)      # NCHW like PyTorch
    params = init_decoder_block_params(kp, depth, Cin, Cout)

    out = decoder_block_forward(x, params, depth)
    out = jax.block_until_ready(out)
    assert out.shape == (N, Cout, 2 * H, 2 * W), out.shape
    assert out.dtype == jnp.float32
    assert bool(jnp.all(jnp.isfinite(out)))
    print("KERNEL_OK")
</pallas_src>

<mosaic_0001>
module attributes {stable_mosaic.version = 11 : i64} {
  func.func @_interp_kernel(%arg0: i32, %arg1: memref<1x16x128xf32, #tpu.memory_space<vmem>>, %arg2: memref<32x16xf32, #tpu.memory_space<vmem>>, %arg3: memref<1x32x128xbf16, #tpu.memory_space<vmem>>) attributes {dimension_semantics = [#tpu.dimension_semantics<parallel>], iteration_bounds = array<i64: 2>, scalar_prefetch = 0 : i64, scratch_operands = 0 : i64, tpu.core_type = #tpu.core_type<tc>, window_params = [{transform_indices = @transform_0, window_bounds = array<i64: 1, 16, 128>}, {pipeline_mode = #tpu.pipeline_mode<synchronous>, transform_indices = @transform_1, window_bounds = array<i64: 32, 16>}, {transform_indices = @transform_2, window_bounds = array<i64: 1, 32, 128>}]} {
    %c0 = arith.constant 0 : index
    %c0_0 = arith.constant 0 : index
    %c0_1 = arith.constant 0 : index
    %0 = vector.load %arg1[%c0, %c0_0, %c0_1] : memref<1x16x128xf32, #tpu.memory_space<vmem>>, vector<1x16x128xf32>
    %1 = vector.shape_cast %0 : vector<1x16x128xf32> to vector<16x128xf32>
    %c0_2 = arith.constant 0 : index
    %c0_3 = arith.constant 0 : index
    %2 = vector.load %arg2[%c0_2, %c0_3] : memref<32x16xf32, #tpu.memory_space<vmem>>, vector<32x16xf32>
    %cst = arith.constant dense<0.000000e+00> : vector<32x128xf32>
    %3 = tpu.matmul %2, %1, %cst {dimension_numbers = #tpu.dot_dimension_numbers<[1], [0], [0], [1], [0, 0, 1, 1], [], []>} : vector<32x16xf32>, vector<16x128xf32>, vector<32x128xf32> -> vector<32x128xf32>
    %4 = arith.truncf %3 : vector<32x128xf32> to vector<32x128xbf16>
    %c0_4 = arith.constant 0 : index
    %c0_5 = arith.constant 0 : index
    %c0_6 = arith.constant 0 : index
    %5 = vector.load %arg3[%c0_4, %c0_5, %c0_6] : memref<1x32x128xbf16, #tpu.memory_space<vmem>>, vector<1x32x128xbf16>
    %6 = vector.shape_cast %5 : vector<1x32x128xbf16> to vector<32x128xbf16>
    %7 = vector.shape_cast %4 : vector<32x128xbf16> to vector<1x32x128xbf16>
    tpu.vector_store %arg3[%c0_4, %c0_5, %c0_6], %7 {strides = array<i32>} : memref<1x32x128xbf16, #tpu.memory_space<vmem>>, vector<1x32x128xbf16>,
    return
  }
  func.func @transform_0(%arg0: i32) -> (i32, i32, i32) {
    %c0_i32 = arith.constant 0 : i32
    %c0_i32_0 = arith.constant 0 : i32
    %c0_i32_1 = arith.constant 0 : i32
    return %arg0, %c0_i32, %c0_i32_0 : i32, i32, i32
  }
  func.func @transform_1(%arg0: i32) -> (i32, i32) {
    %c0_i32 = arith.constant 0 : i32
    %c0_i32_0 = arith.constant 0 : i32
    %c0_i32_1 = arith.constant 0 : i32
    return %c0_i32, %c0_i32_0 : i32, i32
  }
  func.func @transform_2(%arg0: i32) -> (i32, i32, i32) {
    %c0_i32 = arith.constant 0 : i32
    %c0_i32_0 = arith.constant 0 : i32
    %c0_i32_1 = arith.constant 0 : i32
    return %arg0, %c0_i32, %c0_i32_0 : i32, i32, i32
  }
}

</mosaic_0001>

<bundles_post_ra>
// kernel: tpu_custom_call.1
= control target key start
LH: loop header
LB: loop body
LE: loop exit
PB: predicated region body
PF: predicated region fallthrough
CT: control target
= control target key end

     0   :  { %7 = vsyncpa [#allocation3], 0  ;;  %s530_s0 = inlined_call_operand.vmem [shape: f32[2,16,128], index: 0, kind: input, shape index: {}]   ;;  %s531_s1 = inlined_call_operand.vmem [shape: f32[32,16], index: 1, kind: input, shape index: {}]   ;;  %s532_s2 = inlined_call_operand.hbm [shape: bf16[2,32,128], index: 2, kind: output, shape index: {}]  }
   0x1   :  { %9 = vsyncpa [#allocation3 + $0x1], 0  ;;  %s433_s9 = smov 0   ;;  %s435_s10 = smov 0  }
   0x2   :  { %s437_s11 = smov 0   ;;  %s439_s12 = smov 0  }
   0x3 LB: > { %s454_s13 = sadd.s32 4294967295, %s414_s12   ;;  %s276_s14 = sadd.s32 4294967294, %s414_s12   ;;  %s414_s12 = sphi %s439_s12, %s538_s12   ;;  %s410_s11 = sphi %s437_s11, %s537_s11   ;;  %s406_s10 = sphi %s435_s10, %s536_s10   ;;  %s402_s9 = sphi %s433_s9, %s535_s9  }
   0x4   : > { %s458_s15 = sadd.s32 1, %s414_s12   ;;  %s69_s16 = sadd.s32 1, %s410_s11 }
   0x5   : > { %s66_s17 = ssub.s32 %s414_s12, %s458_s15  ;;  %p79_p0 = scmp.ne.s32.totalorder %s410_s11, %s406_s10 }
   0x6   : > { %p67_p1 = scmp.eq.s32.totalorder %s66_s17, 0  ;;  %p80_p2 = scmp.eq.s32.totalorder %s454_s13, 1 }
   0x7   : > { %p85_p3 = scmp.ne.s32.totalorder %s406_s10, %s402_s9  ;;  %p86_p4 = scmp.eq.s32.totalorder %s276_s14, 1 }
   0x8   : > { %s469_s18 = scalar_select %p67_p1, %s410_s11, %s69_s16  }
   0x9   : > { %p471_p5 = por %p80_p2, %p79_p0  ;;  %p475_p6 = por %p86_p4, %p85_p3 }
   0xa   : > { %p279_p7 = scmp.ge.s32.totalorder %s414_s12, 1  ;;  %p115_p8 = scmp.lt.s32.totalorder %s414_s12, 3 }
   0xc   : > { %p116_p9 = pnand %p279_p7, %p115_p8 }
   0xd   : > { %p137_p10 = scmp.lt.s32.totalorder (!%p116_p9), %s454_s13, 1  ;;  %s134_s6 = sand.u32 (!%p116_p9), 1, %s406_s10  }
   0xe   : > { %119 = sbr.rel (%p116_p9) target bundleno = 165 (0xa5), region = 28  ;;  %s280_s7 = sshll.u32 (!%p116_p9), %s134_s6, 4 }
   0xf   : > { %s293_s8 = sshll.u32 (!%p116_p9), %s454_s13, 4  ;;  %s199_s24 = scalar_lea.sflag (!%p116_p9), [#allocation3], %s134_s6 }
  0x10   : > { %s210_s17 = scalar_lea.hbm (!%p116_p9), %s532_s2, %s293_s8  ;;  %s372_s28 = scalar_lea.hbm (!%p116_p9), %s532_s2, 32 }
  0x11   : > { %s213_s23 = sshll.u32 (!%p116_p9), %s210_s17, 4  ;;  %s214_s23 = int_to_ptr.hbm [resolvable:$true] %s213_s23 }
  0x13   : > { %s138_s21 = scalar_select %p137_p10, %s454_s13, 1  ;;  %v146_v2 = vld [vmem:[%s531_s1 + $0x10] sm:$0xff]  ;;  %vm148_vm0 = vcmask 130048   ;;  %v147_v3 = vld [vmem:[%s531_s1 + $0x18] sm:$0xff]  ;;  %v144_v4 = vld [vmem:[%s531_s1] sm:$0xff] }
  0x14   : > { %v145_v5 = vld [vmem:[%s531_s1 + $0x8] sm:$0xff]  ;;  %s366_s13 = sshra.s32 %s214_s23, 4  ;;  %s367_s13 = int_to_ptr.hbm [resolvable:$true] %s366_s13 }
  0x15   : > { %s292_s22 = sshll.u32 %s138_s21, 4  ;;  %s136_s21 = scalar_lea.vmem [#allocation2], %s280_s7 }
  0x16   : > { %s141_s25 = scalar_lea.vmem %s530_s0, %s292_s22  ;;  %s211_s22 = sshll.u32 %s136_s21, 4  ;;  %s212_s22 = int_to_ptr.vmem [resolvable:$true] %s211_s22 }
  0x17   : > { %v143_v0 = vld [vmem:[%s141_s25 + $0x8] sm:$0xff]  ;;  %v142_v1 = vld [vmem:[%s141_s25] sm:$0xff]  ;;  %s368_s25 = scalar_lea.hbm %s367_s13, 16  ;;  %p373_p0 = scmp.lt.s32.totalorder %s367_s13, %s532_s2 }
  0x18   : > { %306 = vmatpush.msra.mxu2 %v143_v0  ;;  %307 = vmatpush.msra.mxu3 %v143_v0  ;;  %p369_p11 = scmp.ne.s32.totalorder %s367_s13, %s368_s25  ;;  %p374_p1 = scmp.lt.s32.totalorder %s372_s28, %s368_s25 }
  0x19   : > { %175 = vmatpush.msra.mxu0 %v143_v0  ;;  %305 = vmatpush.msra.mxu1 %v143_v0 }
  0x1a   : > { %309 = vmatpush.msra.mxu2 %v142_v1  ;;  %310 = vmatpush.msra.mxu3 %v142_v1  ;;  %p370_p12 = pnand %p369_p11, %p471_p5  ;;  %p375_p2 = por %p374_p1, %p373_p0 }
  0x1b   : > { %285 = vmatmul.msk.f32.vlgmr.msra.gmra.mxu2 %vm148_vm0, %v146_v2  ;;  %286 = vmatmul.msk.f32.vlgmr.msra.gmra.mxu3 %vm148_vm0, %v147_v3 }
  0x1c   : > { %176 = vmatpush.msra.mxu0 %v142_v1  ;;  %308 = vmatpush.msra.mxu1 %v142_v1  ;;  %p371_p13 = pneg %p370_p12 }
  0x1d   : > { %283 = vmatmul.msk.f32.vlgmr.msra.gmra.mxu0 %vm148_vm0, %v144_v4  ;;  %284 = vmatmul.msk.f32.vlgmr.msra.gmra.mxu1 %vm148_vm0, %v145_v5 }
  0x1e   : > { %p376_p3 = pnand %p375_p2, %p371_p13 }
  0x9a   : > { %v178_v6 = vpop.f32.mrf.mxu0  ;;  %v181_v7 = vpop.f32.mrf.mxu1 }
  0x9b   : > { %v297_v8 = vpack.c.bf16 %v181_v7, %v178_v6 }
  0x9d   : > { %298 = vst [vmem:[%s136_s21] sm:$0xff] %v297_v8  }
  0x9e   : > { %v184_v9 = vpop.f32.mrf.mxu2  ;;  %v187_v10 = vpop.f32.mrf.mxu3 }
  0x9f   : > { %v302_v11 = vpack.c.bf16 %v187_v10, %v184_v9 }
  0xa1   : > { %304 = vst [vmem:[%s136_s21 + $0x8] sm:$0xff] %v302_v11  }
  0xa2   : > { %379 = shalt.err (!%p376_p3)
}
  0xa3   : > { %s416_s3 = smov 64   ;;  %s417_s4 = smov 4  }
  0xa4   : > { %311 = dma.vmem_to_hbm [thread:$0]  (%p471_p5), %s212_s22, 256, %s214_s23, %s199_s24, %s416_s3, %s416_s3, %s417_s4  }
  0xa5 PF: > { %p317_p4 = scmp.ge.s32.totalorder %s414_s12, 2  ;;  %s228_s5 = sand.u32 1, %s402_s9  }
  0xa6   : > { %s229_s6 = scalar_lea.sflag [#allocation3], %s228_s5 }
  0xa7   : > { %p314_p7 = pnand %p317_p4, %p475_p6 }
  0xa9   : > { %p315_p8 = pneg %p314_p7 }
  0xab   : > { %397 = dma.done.wait (%p315_p8), %s229_s6, 256  }
  0xac   : > { %399 = vsyncadd (%p315_p8), %s229_s6, 4294967040  ;;  %p12_p9 = scmp.ge.s32.totalorder %s458_s15, 4   ;;  %s535_s9 = smov %s406_s10 }
  0xad   : > { %s536_s10 = smov %s410_s11  ;;  %s537_s11 = smov %s469_s18 }
  0xae   : > { %s538_s12 = smov %s458_s15  ;;  %14 = sbr.rel (!%p12_p9) target bundleno = 3 (0x3), region = 63 }
  0xb3   :  { %235 = vsyncpa [#allocation3], 1 }
  0xb4   :  { %237 = vsyncpa [#allocation3 + $0x1], 1 }

</bundles_post_ra>
